<compile_context>
chip_gen: v6e
topology: v6e:2x2x1
jax: 0.10.0
libtpu: 0.0.40
codegen_flags: <defaults>
</compile_context>

<pallas_src>
import functools

import jax
import jax.numpy as jnp
from jax import lax
from jax.experimental import pallas as pl
from jax.experimental.pallas import tpu as pltpu


def _round_up(a, m):
    return ((a + m - 1) // m) * m


def _seg_loss_kernel(x_ref, t_ref, out_ref, counts_ref, sdiff_ref, *,
                     total_pixels, upper_bound, norm):
    """Accumulate per-class partials over pixel tiles; finalize weights/loss on the last tile."""
    p = pl.program_id(1)
    n_p = pl.num_programs(1)

    @pl.when(p == 0)
    def _():
        counts_ref[...] = jnp.zeros_like(counts_ref)
        sdiff_ref[...] = jnp.zeros_like(sdiff_ref)

    x = x_ref[0].astype(jnp.float32)     # (C, TP) logits tile, cast after native-dtype DMA
    t = t_ref[0].astype(jnp.int32)       # (1, TP) targets tile, widened after narrow DMA
    C, TP = x.shape

    # Ragged-tail mask (review #3): grid is cdiv(P, tp) with no wrapper-side padding, so the
    # last tile's out-of-bounds lanes (garbage data) are masked here.
    remaining = total_pixels - p * TP                              # >= TP except on last tile
    lane_idx = lax.broadcasted_iota(jnp.int32, (1, TP), 1)
    valid = lane_idx < remaining                                   # (1, TP)

    # Selection mask; ignored (255) / out-of-range labels never match a class id (review #5:
    # no float one-hot / extra multiply).
    class_ids = lax.broadcasted_iota(jnp.int32, (C, TP), 0)
    sel = jnp.logical_and(t == class_ids, valid)                   # (C, TP)

    # Per-pixel (per-lane) log-softmax pieces; xm reused for the selected log-prob.
    m = jnp.max(x, axis=0, keepdims=True)                          # (1, TP)
    xm = x - m                                                     # (C, TP)
    logsum = jnp.log(jnp.sum(jnp.exp(xm), axis=0, keepdims=True))  # (1, TP)
    # TODO(synk): on v7x with bf16 logits, computing exp(xm) in bf16 (f32 accumulate) roughly
    #             doubles EUP throughput and keeps the kernel HBM-bound; needs per-generation
    #             gating (v5e has no bf16 EUP) plus re-validation, so it is not enabled here.

    counts_ref[...] += jnp.sum(jnp.where(sel, 1.0, 0.0),
                               axis=1, keepdims=True)              # (C, 1) class pixel counts
    sdiff_ref[...] += jnp.sum(jnp.where(sel, xm - logsum, 0.0),
                              axis=1, keepdims=True)               # (C, 1) sum of target logp
    # Note on review #8: (C, 128) lane-shaped accumulators would require a (C, TP//128, 128)
    # reshape, which on TPU is a cross-sublane relayout (not a view); the lane reduce above
    # already lowers to vreg-wise VPU adds plus one small intra-vreg reduce per tile, so the
    # (C, 1) accumulators are kept.

    @pl.when(p == n_p - 1)
    def _():
        counts = counts_ref[...]                                   # (C, 1)
        sdiff = sdiff_ref[...]                                     # (C, 1)
        total = jnp.sum(counts)                                    # number of valid pixels
        safe_total = jnp.where(total > 0.0, total, 1.0)            # guard all-ignored image
        hist = counts / safe_total
        # TODO(synk): np.histogram's right-inclusive last bin would also count target==C into
        #             class C-1; labels are assumed to be {0..C-1, 255} only.
        if norm:
            w = jnp.where(hist > 0.0, upper_bound / hist + 1.0, 1.0)
        else:
            w = jnp.where(hist > 0.0, upper_bound * (1.0 - hist) + 1.0, 1.0)
        numer = jnp.sum(w * sdiff)                                 # sum_p w[t_p] * logp[t_p, p]
        denom = jnp.sum(w * counts)                                # sum_p w[t_p]
        denom_safe = jnp.where(denom > 0.0, denom, 1.0)            # all-ignored -> 0, not NaN
        loss = -numer / denom_safe
        out_ref[...] = jnp.zeros_like(out_ref) + loss              # lane-dense (1,1,128) bcast


def _choose_pixel_tile(num_classes, x_itemsize, t_itemsize, num_pixels,
                       pixel_tile=None, vmem_budget_bytes=40 * 1024 * 1024):
    """Largest lane-dense pixel tile whose per-step VMEM footprint stays under budget.

    Per-pixel cost of one tile column:
      2 double-buffered logits buffers (native dtype) + 2 double-buffered target buffers
      + ~4 live f32 (C, tp) temporaries from the in-kernel cast / exp / where chain.
    The 40 MiB default (with vmem_limit_bytes=48 MiB) keeps the kernel inside v7x's 64 MiB
    VMEM while making the tile tens of thousands of pixels, so the ~0.35 us per-grid-step
    overhead becomes negligible versus the tile DMA (review #1/#2).
    """
    per_pixel = 2 * num_classes * x_itemsize + 2 * t_itemsize + 4 * num_classes * 4
    tp = vmem_budget_bytes // per_pixel
    tp = min(tp, 65536)                             # diminishing returns beyond ~64K lanes
    if pixel_tile is not None:
        tp = min(tp, int(pixel_tile))
    tp = min(tp, _round_up(num_pixels, 128))        # do not over-allocate for small images
    tp = max(128, (tp // 128) * 128)                # lane-dense: multiple of 128
    return int(tp)


def image_based_cross_entropy_loss_2d(inputs, targets, num_classes, upper_bound=1.0,
                                      norm=False, pixel_tile=None,
                                      tile_vmem_budget_bytes=40 * 1024 * 1024):
    """inputs: (N, C, H, W) float logits (any float dtype, DMA'd natively);
    targets: (N, H, W) integer labels (any <=32-bit int dtype, DMA'd natively)."""
    N, C, H, W = inputs.shape
    assert C == num_classes
    P = H * W

    # Logits keep their NATIVE dtype (bf16 halves HBM traffic); cast to f32 in-kernel.
    x = inputs.reshape(N, C, P)

    # Targets keep their native (possibly narrow) integer dtype and are widened in-kernel
    # (review #4): no wrapper-side astype pass over HBM.
    t = targets.reshape(N, 1, P)
    if t.dtype.itemsize > 4:
        t = t.astype(jnp.int32)

    tp = _choose_pixel_tile(C, x.dtype.itemsize, t.dtype.itemsize, P,
                            pixel_tile=pixel_tile,
                            vmem_budget_bytes=tile_vmem_budget_bytes)
    n_tiles = pl.cdiv(P, tp)                        # ragged tail handled in-kernel (no pad)

    kernel = functools.partial(_seg_loss_kernel, total_pixels=P,
                               upper_bound=float(upper_bound), norm=bool(norm))

    per_image = pl.pallas_call(
        kernel,
        out_shape=jax.ShapeDtypeStruct((N, 1, 128), jnp.float32),
        grid_spec=pltpu.PrefetchScalarGridSpec(
            num_scalar_prefetch=0,
            grid=(N, n_tiles),                      # image axis first, pixel tiles last
            in_specs=[
                # TODO(synk): on v5e, pipeline_mode=pl.Buffered(3) on this logits spec can hide
                #             residual exposed DMA; left at the default depth of 2.
                pl.BlockSpec((1, C, tp), lambda i, p: (i, 0, p)),   # logits tile (native dtype)
                pl.BlockSpec((1, 1, tp), lambda i, p: (i, 0, p)),   # targets tile (native int)
            ],
            out_specs=pl.BlockSpec((1, 1, 128), lambda i, p: (i, 0, 0)),
            scratch_shapes=[
                pltpu.VMEM((C, 1), jnp.float32),    # per-class pixel counts
                pltpu.VMEM((C, 1), jnp.float32),    # per-class sum of target log-probs
            ],
        ),
        compiler_params=pltpu.CompilerParams(
            dimension_semantics=("parallel", "arbitrary"),   # image axis shards across TCs
            vmem_limit_bytes=48 * 1024 * 1024,               # <= v7x 64 MiB physical VMEM
        ),
    )(x, t)

    # TODO(synk): for batch-1 / odd-N inference on v7x, add a second "parallel" grid axis that
    #             splits pixel tiles into 2 groups, emit per-group (counts, sdiff) partials and
    #             finalize in the wrapper so both TensorCores stay busy.
    return jnp.sum(per_image[:, 0, 0])


def _reference_loss(inputs, targets, num_classes, upper_bound=1.0, norm=False):
    """Pure-JAX reference matching the PyTorch forward (ImageBasedCrossEntropyLoss2d)."""
    N, C, H, W = inputs.shape
    total = jnp.float32(0.0)
    for i in range(N):
        x = inputs[i].reshape(C, -1).astype(jnp.float32)
        t = targets[i].reshape(-1).astype(jnp.int32)
        onehot = (t[None, :] == jnp.arange(C, dtype=jnp.int32)[:, None]).astype(jnp.float32)
        counts = onehot.sum(axis=1)
        hist = counts / counts.sum()
        if norm:
            w = jnp.where(hist > 0, upper_bound * (1.0 / hist) + 1.0, 1.0)
        else:
            w = jnp.where(hist > 0, upper_bound * (1.0 - hist) + 1.0, 1.0)
        logp = jax.nn.log_softmax(x, axis=0)
        w_pix = (onehot * w[:, None]).sum(0)
        lp_pix = (onehot * logp).sum(0)
        total = total + (-(w_pix * lp_pix).sum() / w_pix.sum())
    return total


if __name__ == "__main__":
    key = jax.random.PRNGKey(0)
    ignore_index = 255
    k1, k2, k3, k4, k5, k6 = jax.random.split(key, 6)

    # Test A: f32 logits / int32 targets, pixel_tile=128 -> two full pixel tiles per image
    # (exercises the accumulate-then-finalize path).  Real segmentation sizes use the
    # VMEM-budgeted default tile (tens of thousands of pixels).
    N, C, H, W = 2, 4, 16, 16
    inputs_a = jax.random.normal(k1, (N, C, H, W), dtype=jnp.float32)
    targets_a = jax.random.randint(k2, (N, H, W), 0, C, dtype=jnp.int32)
    targets_a = jnp.where(jax.random.bernoulli(k3, 0.1, (N, H, W)),
                          jnp.int32(ignore_index), targets_a)
    loss_a = image_based_cross_entropy_loss_2d(inputs_a, targets_a, num_classes=C,
                                               upper_bound=1.0, norm=False, pixel_tile=128)
    loss_a = jax.block_until_ready(loss_a)
    ref_a = _reference_loss(inputs_a, targets_a, num_classes=C, upper_bound=1.0, norm=False)
    assert jnp.allclose(loss_a, ref_a, rtol=1e-4, atol=1e-4), (loss_a, ref_a)

    # Test B: bf16 logits DMA'd in native dtype / int16 targets (narrow-target path);
    # P = 200 is not a multiple of the 128-pixel tile, exercising the in-kernel ragged mask.
    N2, C2, H2, W2 = 2, 5, 10, 20
    inputs_b = jax.random.normal(k4, (N2, C2, H2, W2), dtype=jnp.float32).astype(jnp.bfloat16)
    targets_b = jax.random.randint(k5, (N2, H2, W2), 0, C2, dtype=jnp.int32)
    targets_b = jnp.where(jax.random.bernoulli(k6, 0.1, (N2, H2, W2)),
                          jnp.int32(ignore_index), targets_b).astype(jnp.int16)
    loss_b = image_based_cross_entropy_loss_2d(inputs_b, targets_b, num_classes=C2,
                                               upper_bound=1.0, norm=False, pixel_tile=128)
    loss_b = jax.block_until_ready(loss_b)
    ref_b = _reference_loss(inputs_b, targets_b, num_classes=C2, upper_bound=1.0, norm=False)
    assert jnp.allclose(loss_b, ref_b, rtol=1e-3, atol=1e-3), (loss_b, ref_b)

    print("KERNEL_OK")
</pallas_src>

<mosaic_0001>
module attributes {stable_mosaic.version = 11 : i64} {
  func.func @_seg_loss_kernel(%arg0: i32, %arg1: i32, %arg2: memref<1x4x128xf32, #tpu.memory_space<vmem>>, %arg3: memref<1x1x128xi32, #tpu.memory_space<vmem>>, %arg4: memref<1x1x128xf32, #tpu.memory_space<vmem>>, %arg5: memref<4x1xf32, #tpu.memory_space<vmem>>, %arg6: memref<4x1xf32, #tpu.memory_space<vmem>>) attributes {dimension_semantics = [#tpu.dimension_semantics<parallel>, #tpu.dimension_semantics<arbitrary>], iteration_bounds = array<i64: 2, 2>, scalar_prefetch = 0 : i64, scratch_operands = 2 : i64, tpu.core_type = #tpu.core_type<tc>, window_params = [{transform_indices = @transform_0, window_bounds = array<i64: 1, 4, 128>}, {transform_indices = @transform_1, window_bounds = array<i64: 1, 1, 128>}, {transform_indices = @transform_2, window_bounds = array<i64: 1, 1, 128>}]} {
    %c0_i32 = arith.constant 0 : i32
    %0 = arith.cmpi eq, %arg1, %c0_i32 : i32
    %1 = arith.extui %0 : i1 to i32
    %c0_i32_0 = arith.constant 0 : i32
    %2 = arith.cmpi ne, %1, %c0_i32_0 : i32
    scf.if %2 {
      %cst_21 = arith.constant 0.000000e+00 : f32
      %45 = vector.broadcast %cst_21 : f32 to vector<4x1xf32>
      %c0_22 = arith.constant 0 : index
      %c0_23 = arith.constant 0 : index
      %46 = vector.load %arg5[%c0_22, %c0_23] : memref<4x1xf32, #tpu.memory_space<vmem>>, vector<4x1xf32>
      tpu.vector_store %arg5[%c0_22, %c0_23], %45 {strides = array<i32>} : memref<4x1xf32, #tpu.memory_space<vmem>>, vector<4x1xf32>,
      %cst_24 = arith.constant 0.000000e+00 : f32
      %47 = vector.broadcast %cst_24 : f32 to vector<4x1xf32>
      %c0_25 = arith.constant 0 : index
      %c0_26 = arith.constant 0 : index
      %48 = vector.load %arg6[%c0_25, %c0_26] : memref<4x1xf32, #tpu.memory_space<vmem>>, vector<4x1xf32>
      tpu.vector_store %arg6[%c0_25, %c0_26], %47 {strides = array<i32>} : memref<4x1xf32, #tpu.memory_space<vmem>>, vector<4x1xf32>,
    } else {
    }
    %c0 = arith.constant 0 : index
    %c0_1 = arith.constant 0 : index
    %c0_2 = arith.constant 0 : index
    %3 = vector.load %arg2[%c0, %c0_1, %c0_2] : memref<1x4x128xf32, #tpu.memory_space<vmem>>, vector<1x4x128xf32>
    %4 = vector.shape_cast %3 : vector<1x4x128xf32> to vector<4x128xf32>
    %c0_3 = arith.constant 0 : index
    %c0_4 = arith.constant 0 : index
    %c0_5 = arith.constant 0 : index
    %5 = vector.load %arg3[%c0_3, %c0_4, %c0_5] : memref<1x1x128xi32, #tpu.memory_space<vmem>>, vector<1x1x128xi32>
    %6 = vector.shape_cast %5 : vector<1x1x128xi32> to vector<1x128xi32>
    %c128_i32 = arith.constant 128 : i32
    %7 = arith.muli %arg1, %c128_i32 : i32
    %c256_i32 = arith.constant 256 : i32
    %8 = arith.subi %c256_i32, %7 : i32
    %9 = tpu.iota {dimensions = array<i32: 1>} : vector<1x128xi32>
    %10 = vector.broadcast %8 : i32 to vector<1x128xi32>
    %11 = arith.cmpi slt, %9, %10 : vector<1x128xi32>
    %12 = tpu.iota {dimensions = array<i32: 0>} : vector<4x128xi32>
    %13 = vector.broadcast %6 : vector<1x128xi32> to vector<4x128xi32>
    %14 = arith.cmpi eq, %13, %12 : vector<4x128xi32>
    %15 = vector.broadcast %11 : vector<1x128xi1> to vector<4x128xi1>
    %16 = arith.andi %14, %15 : vector<4x128xi1>
    %cst = arith.constant dense<0xFF800000> : vector<128xf32>
    %17 = vector.multi_reduction <maximumf>, %4, %cst [0] : vector<4x128xf32> to vector<128xf32>
    %18 = vector.shape_cast %17 : vector<128xf32> to vector<1x128xf32>
    %19 = vector.broadcast %18 : vector<1x128xf32> to vector<4x128xf32>
    %20 = arith.subf %4, %19 : vector<4x128xf32>
    %21 = math.exp %20 : vector<4x128xf32>
    %cst_6 = arith.constant dense<0.000000e+00> : vector<128xf32>
    %22 = vector.multi_reduction <add>, %21, %cst_6 [0] : vector<4x128xf32> to vector<128xf32>
    %23 = vector.shape_cast %22 : vector<128xf32> to vector<1x128xf32>
    %24 = math.log %23 : vector<1x128xf32>
    %c0_7 = arith.constant 0 : index
    %c0_8 = arith.constant 0 : index
    %25 = vector.load %arg5[%c0_7, %c0_8] : memref<4x1xf32, #tpu.memory_space<vmem>>, vector<4x1xf32>
    %cst_9 = arith.constant 1.000000e+00 : f32
    %cst_10 = arith.constant 0.000000e+00 : f32
    %26 = vector.broadcast %cst_9 : f32 to vector<4x128xf32>
    %27 = vector.broadcast %cst_10 : f32 to vector<4x128xf32>
    %28 = arith.select %16, %26, %27 : vector<4x128xi1>, vector<4x128xf32>
    %cst_11 = arith.constant dense<0.000000e+00> : vector<4xf32>
    %29 = vector.multi_reduction <add>, %28, %cst_11 [1] : vector<4x128xf32> to vector<4xf32>
    %30 = vector.shape_cast %29 : vector<4xf32> to vector<4x1xf32>
    %31 = arith.addf %25, %30 : vector<4x1xf32>
    %c0_12 = arith.constant 0 : index
    %c0_13 = arith.constant 0 : index
    %32 = vector.load %arg5[%c0_12, %c0_13] : memref<4x1xf32, #tpu.memory_space<vmem>>, vector<4x1xf32>
    tpu.vector_store %arg5[%c0_12, %c0_13], %31 {strides = array<i32>} : memref<4x1xf32, #tpu.memory_space<vmem>>, vector<4x1xf32>,
    %c0_14 = arith.constant 0 : index
    %c0_15 = arith.constant 0 : index
    %33 = vector.load %arg6[%c0_14, %c0_15] : memref<4x1xf32, #tpu.memory_space<vmem>>, vector<4x1xf32>
    %34 = vector.broadcast %24 : vector<1x128xf32> to vector<4x128xf32>
    %35 = arith.subf %20, %34 : vector<4x128xf32>
    %cst_16 = arith.constant 0.000000e+00 : f32
    %36 = vector.broadcast %cst_16 : f32 to vector<4x128xf32>
    %37 = arith.select %16, %35, %36 : vector<4x128xi1>, vector<4x128xf32>
    %cst_17 = arith.constant dense<0.000000e+00> : vector<4xf32>
    %38 = vector.multi_reduction <add>, %37, %cst_17 [1] : vector<4x128xf32> to vector<4xf32>
    %39 = vector.shape_cast %38 : vector<4xf32> to vector<4x1xf32>
    %40 = arith.addf %33, %39 : vector<4x1xf32>
    %c0_18 = arith.constant 0 : index
    %c0_19 = arith.constant 0 : index
    %41 = vector.load %arg6[%c0_18, %c0_19] : memref<4x1xf32, #tpu.memory_space<vmem>>, vector<4x1xf32>
    tpu.vector_store %arg6[%c0_18, %c0_19], %40 {strides = array<i32>} : memref<4x1xf32, #tpu.memory_space<vmem>>, vector<4x1xf32>,
    %c1_i32 = arith.constant 1 : i32
    %42 = arith.cmpi eq, %arg1, %c1_i32 : i32
    %43 = arith.extui %42 : i1 to i32
    %c0_i32_20 = arith.constant 0 : i32
    %44 = arith.cmpi ne, %43, %c0_i32_20 : i32
    scf.if %44 {
      %c0_21 = arith.constant 0 : index
      %c0_22 = arith.constant 0 : index
      %45 = vector.load %arg5[%c0_21, %c0_22] : memref<4x1xf32, #tpu.memory_space<vmem>>, vector<4x1xf32>
      %c0_23 = arith.constant 0 : index
      %c0_24 = arith.constant 0 : index
      %46 = vector.load %arg6[%c0_23, %c0_24] : memref<4x1xf32, #tpu.memory_space<vmem>>, vector<4x1xf32>
      %47 = vector.shape_cast %45 : vector<4x1xf32> to vector<1x4x1xf32>
      %cst_25 = arith.constant dense<0.000000e+00> : vector<1xf32>
      %48 = vector.multi_reduction <add>, %47, %cst_25 [1, 2] : vector<1x4x1xf32> to vector<1xf32>
      %49 = vector.shape_cast %48 : vector<1xf32> to vector<1x1x1xf32>
      %50 = vector.extract %49[0, 0, 0] : f32 from vector<1x1x1xf32>
      %cst_26 = arith.constant 0.000000e+00 : f32
      %51 = arith.cmpf ogt, %50, %cst_26 : f32
      %cst_27 = arith.constant 1.000000e+00 : f32
      %52 = arith.select %51, %50, %cst_27 : f32
      %53 = vector.broadcast %52 : f32 to vector<4x1xf32>
      %54 = arith.divf %45, %53 : vector<4x1xf32>
      %cst_28 = arith.constant 0.000000e+00 : f32
      %55 = vector.broadcast %cst_28 : f32 to vector<4x1xf32>
      %56 = arith.cmpf ogt, %54, %55 : vector<4x1xf32>
      %cst_29 = arith.constant 1.000000e+00 : f32
      %57 = vector.broadcast %cst_29 : f32 to vector<4x1xf32>
      %58 = arith.subf %57, %54 : vector<4x1xf32>
      %cst_30 = arith.constant 1.000000e+00 : f32
      %59 = vector.broadcast %cst_30 : f32 to vector<4x1xf32>
      %60 = arith.mulf %59, %58 : vector<4x1xf32>
      %cst_31 = arith.constant 1.000000e+00 : f32
      %61 = vector.broadcast %cst_31 : f32 to vector<4x1xf32>
      %62 = arith.addf %60, %61 : vector<4x1xf32>
      %cst_32 = arith.constant 1.000000e+00 : f32
      %63 = vector.broadcast %cst_32 : f32 to vector<4x1xf32>
      %64 = arith.select %56, %62, %63 : vector<4x1xi1>, vector<4x1xf32>
      %65 = arith.mulf %64, %46 : vector<4x1xf32>
      %66 = vector.shape_cast %65 : vector<4x1xf32> to vector<1x4x1xf32>
      %cst_33 = arith.constant dense<0.000000e+00> : vector<1xf32>
      %67 = vector.multi_reduction <add>, %66, %cst_33 [1, 2] : vector<1x4x1xf32> to vector<1xf32>
      %68 = vector.shape_cast %67 : vector<1xf32> to vector<1x1x1xf32>
      %69 = vector.extract %68[0, 0, 0] : f32 from vector<1x1x1xf32>
      %70 = arith.mulf %64, %45 : vector<4x1xf32>
      %71 = vector.shape_cast %70 : vector<4x1xf32> to vector<1x4x1xf32>
      %cst_34 = arith.constant dense<0.000000e+00> : vector<1xf32>
      %72 = vector.multi_reduction <add>, %71, %cst_34 [1, 2] : vector<1x4x1xf32> to vector<1xf32>
      %73 = vector.shape_cast %72 : vector<1xf32> to vector<1x1x1xf32>
      %74 = vector.extract %73[0, 0, 0] : f32 from vector<1x1x1xf32>
      %cst_35 = arith.constant 0.000000e+00 : f32
      %75 = arith.cmpf ogt, %74, %cst_35 : f32
      %cst_36 = arith.constant 1.000000e+00 : f32
      %76 = arith.select %75, %74, %cst_36 : f32
      %cst_37 = arith.constant 0.000000e+00 : f32
      %77 = arith.subf %cst_37, %69 : f32
      %78 = arith.divf %77, %76 : f32
      %cst_38 = arith.constant 0.000000e+00 : f32
      %79 = vector.broadcast %cst_38 : f32 to vector<1x1x128xf32>
      %80 = vector.broadcast %78 : f32 to vector<1x1x128xf32>
      %81 = arith.addf %79, %80 : vector<1x1x128xf32>
      %c0_39 = arith.constant 0 : index
      %c0_40 = arith.constant 0 : index
      %c0_41 = arith.constant 0 : index
      %82 = vector.load %arg4[%c0_39, %c0_40, %c0_41] : memref<1x1x128xf32, #tpu.memory_space<vmem>>, vector<1x1x128xf32>
      tpu.vector_store %arg4[%c0_39, %c0_40, %c0_41], %81 {strides = array<i32>} : memref<1x1x128xf32, #tpu.memory_space<vmem>>, vector<1x1x128xf32>,
    } else {
    }
    return
  }
  func.func @transform_0(%arg0: i32, %arg1: i32) -> (i32, i32, i32) {
    %c0_i32 = arith.constant 0 : i32
    %c0_i32_0 = arith.constant 0 : i32
    return %arg0, %c0_i32, %arg1 : i32, i32, i32
  }
  func.func @transform_1(%arg0: i32, %arg1: i32) -> (i32, i32, i32) {
    %c0_i32 = arith.constant 0 : i32
    %c0_i32_0 = arith.constant 0 : i32
    return %arg0, %c0_i32, %arg1 : i32, i32, i32
  }
  func.func @transform_2(%arg0: i32, %arg1: i32) -> (i32, i32, i32) {
    %c0_i32 = arith.constant 0 : i32
    %c0_i32_0 = arith.constant 0 : i32
    %c0_i32_1 = arith.constant 0 : i32
    return %arg0, %c0_i32, %c0_i32_0 : i32, i32, i32
  }
}

</mosaic_0001>

<bundles_post_ra>
// kernel: tpu_custom_call.1
= control target key start
LH: loop header
LB: loop body
LE: loop exit
PB: predicated region body
PF: predicated region fallthrough
CT: control target
= control target key end

     0   :  { %s1028_s0 = inlined_call_operand.hbm [shape: f32[2,4,256], index: 0, kind: input, shape index: {}]   ;;  %s1029_s1 = inlined_call_operand.hbm [shape: s32[2,1,256], index: 1, kind: input, shape index: {}]   ;;  %s1030_s2 = inlined_call_operand.hbm [shape: f32[2,1,128], index: 2, kind: output, shape index: {}]  }
   0x1   :  { %1034 = sst [smem:[#allocation16_spill]] %s1028_s0 }
   0x2   :  { %7 = vsyncpa [#allocation5], 0 }
   0x3   :  { %9 = vsyncpa [#allocation5 + $0x1], 0 }
   0x4   :  { %10 = vsyncpa [#allocation8], 0 }
   0x5   :  { %12 = vsyncpa [#allocation8 + $0x1], 0 }
   0x6   :  { %13 = vsyncpa [#allocation6], 0 }
   0x7   :  { %15 = vsyncpa [#allocation6 + $0x1], 0  ;;  %s789_s9 = smov 0   ;;  %s791_s10 = smov 0  }
   0x8   :  { %s793_s11 = smov 0   ;;  %s795_s12 = smov 0  }
   0x9   :  { %s797_s13 = smov 0   ;;  %s799_s14 = smov 0  }
   0xa   :  { %s801_s15 = smov 0   ;;  %s803_s16 = smov 0  }
   0xb   :  { %s805_s17 = smov 0   ;;  %s807_s18 = smov 0  }
   0xc   :  { %s809_s19 = smov 0  }
   0xd LB: > { %1035 = sst [smem:[#allocation13_spill]] %s763_s18  ;;  %s444_s20 = sadd.s32 4294967295, %s767_s19   ;;  %s767_s19 = sphi %s809_s19, %s21_s19   ;;  %s763_s18 = sphi %s807_s18, %s1049_s18   ;;  %s759_s17 = sphi %s805_s17, %s1057_s17   ;;  %s755_s16 = sphi %s803_s16, %s1047_s16   ;;  %s751_s15 = sphi %s801_s15, %s1056_s15   ;;  %s747_s14 = sphi %s799_s14, %s1055_s14   ;;  %s743_s13 = sphi %s797_s13, %s1054_s13   ;;  %s739_s12 = sphi %s795_s12, %s1053_s12   ;;  %s735_s11 = sphi %s793_s11, %s1052_s11   ;;  %s731_s10 = sphi %s791_s10, %s1051_s10   ;;  %s727_s9 = sphi %s789_s9, %s1050_s9  }
   0xe   : > { %s445_s21 = sadd.s32 4294967294, %s767_s19   ;;  %s30_s22 = sadd.s32 1, %s759_s17 }
   0xf   : > { %s33_s23 = sadd.s32 1, %s763_s18  ;;  %p31_p0 = scmp.ge.s32.totalorder %s30_s22, 2 }
  0x10   : > { %s42_s24 = sadd.s32 1, %s747_s14  ;;  %p49_p1 = scmp.ne.s32.totalorder %s747_s14, %s743_s13 }
  0x11   : > { %p50_p2 = scmp.eq.s32.totalorder %s767_s19, 0  ;;  %s1059_s22 = smov (%p31_p0, %s30_s22), 0 }
  0x12   : > { %1036 = sst [smem:[#allocation14_spill]] %s1059_s22  ;;  %s1061_s23 = smov (!%p31_p0, %s33_s23), %s763_s18 }
  0x13   : > { %s38_s25 = ssub.s32 %s759_s17, %s1059_s22  ;;  %p855_p3 = por %p50_p2, %p49_p1 }
  0x14   : > { %p35_p4 = scmp.ge.s32.totalorder %s1061_s23, 2  ;;  %p55_p5 = scmp.ne.s32.totalorder %s743_s13, %s739_s12 }
  0x15   : > { %p56_p6 = scmp.eq.s32.totalorder %s444_s20, 0  ;;  %s96_s27 = sadd.s32 1, %s735_s11 }
  0x16   : > { %s1063_s23 = smov (%p35_p4, %s1061_s23), 0  ;;  %p106_p8 = scmp.ne.s32.totalorder %s735_s11, %s731_s10 }
  0x17   : > { %1038 = sst [smem:[#allocation15_spill]] %s1063_s23  ;;  %p863_p7 = por %p56_p6, %p55_p5 }
  0x18   : > { %s37_s29 = ssub.s32 %s763_s18, %s1063_s23  ;;  %p107_p9 = scmp.eq.s32.totalorder %s444_s20, 3 }
  0x19   : > { %s39_s30 = sor.u32 %s38_s25, %s37_s29  ;;  %p94_p10 = scmp.eq.s32.totalorder %s37_s29, 0 }
  0x1a   : > { %p40_p11 = scmp.eq.s32.totalorder %s39_s30, 0  ;;  %p871_p12 = por %p107_p9, %p106_p8 }
  0x1b   : > { %s876_s4 = scalar_select %p94_p10, %s735_s11, %s96_s27  }
  0x1c   : > { %s879_s5 = scalar_select %p40_p11, %s747_s14, %s42_s24  }
  0x1d   : > { %p112_p13 = scmp.ne.s32.totalorder %s731_s10, %s727_s9  ;;  %p113_p0 = scmp.eq.s32.totalorder %s445_s21, 3 }
  0x1e   : > { %p487_p1 = scmp.lt.s32.totalorder %s767_s19, 4  ;;  %s889_s7 = sand.u32 1, %s747_s14  }
  0x1f   : > { %p884_p2 = por %p113_p0, %p112_p13  ;;  %s448_s8 = sshll.u32 %s889_s7, 2 }
  0x20   : > { %s449_s12 = sshll.u32 %s763_s18, 1  ;;  %s137_s25 = scalar_lea.vmem [#allocation4], %s448_s8 }
  0x21   : > { %s894_s20 = sadd.s32 %s759_s17, %s449_s12  ;;  %s146_s24 = sshll.u32 %s137_s25, 4  ;;  %s147_s24 = int_to_ptr.vmem [resolvable:$true] %s146_s24 }
  0x22   : > { %s450_s27 = sshll.u32 %s894_s20, 6  ;;  %s1042_s0 = sld [smem:[#allocation16_spill]] }
  0x23   : > { %p902_p4 = pnand %p487_p1, %p855_p3  ;;  %p453_p5 = scmp.ge.s32.totalorder %s767_s19, 1 }
  0x24   : > { %p170_p6 = scmp.lt.s32.totalorder %s767_s19, 5  ;;  %s134_s12 = scalar_lea.sflag [#allocation5], %s889_s7 }
  0x25   : > { %p589_p8 = pneg %p902_p4  ;;  %s600_s8 = scalar_lea.vmem %s147_s24, 64 }
  0x26   : > { %p601_p9 = scmp.ne.s32.totalorder %s147_s24, %s600_s8  ;;  %s769_s25 = smov [#allocation4]  }
  0x28   : > { %s144_s30 = scalar_lea.hbm %s1042_s0, %s450_s27  ;;  %p603_p10 = pnand %p601_p9, %p589_p8 }
  0x29   : > { %s605_s27 = sshll.u32 %s769_s25, 4  ;;  %s606_s27 = int_to_ptr.vmem [resolvable:$false] %s605_s27 }
  0x2a   : > { %p604_p11 = pneg %p603_p10  ;;  %s607_s26 = scalar_lea.vmem %s606_s27, 128 }
  0x2b   : > { %p608_p3 = scmp.lt.s32.totalorder %s147_s24, %s606_s27  ;;  %p609_p13 = scmp.lt.s32.totalorder %s607_s26, %s600_s8 }
  0x2d   : > { %p610_p0 = por %p609_p13, %p608_p3 }
  0x2f   : > { %p611_p1 = pnand %p610_p0, %p604_p11 }
  0x31   : > { %614 = shalt.err (!%p611_p1)
}
  0x32   : > { %479 = dma.hbm_to_vmem [thread:$0]  (!%p902_p4), %s144_s30, 64, %s147_s24, %s134_s12  }
  0x33   : > { %p920_p9 = pnand %p453_p5, %p170_p6  ;;  %s452_s21 = sshll.u32 %s894_s20, 4 }
  0x34   : > { %s156_s8 = scalar_lea.vmem [#allocation7], %s889_s7  ;;  %s163_s0 = scalar_lea.hbm %s1029_s1, %s452_s21 }
  0x35   : > { %s165_s25 = sshll.u32 %s156_s8, 4  ;;  %s154_s22 = scalar_lea.sflag [#allocation8], %s889_s7  ;;  %s166_s25 = int_to_ptr.vmem [resolvable:$true] %s165_s25 }
  0x36   : > { %s628_s18 = scalar_lea.vmem %s166_s25, 16  ;;  %s770_s24 = smov [#allocation7]  }
  0x37   : > { %p629_p10 = scmp.ne.s32.totalorder %s166_s25, %s628_s18  ;;  %s633_s30 = sshll.u32 %s770_s24, 4  ;;  %s634_s30 = int_to_ptr.vmem [resolvable:$false] %s633_s30 }
  0x38   : > { %s635_s12 = scalar_lea.vmem %s634_s30, 32  ;;  %p636_p5 = scmp.lt.s32.totalorder %s166_s25, %s634_s30 }
  0x39   : > { %p631_p11 = pnand %p629_p10, %p589_p8  ;;  %p637_p6 = scmp.lt.s32.totalorder %s635_s12, %s628_s18 }
  0x3b   : > { %p632_p3 = pneg %p631_p11  ;;  %p638_p13 = por %p637_p6, %p636_p5 }
  0x3d   : > { %p639_p0 = pnand %p638_p13, %p632_p3 }
  0x3f   : > { %642 = shalt.err (!%p639_p0)
}
  0x40   : > { %482 = dma.hbm_to_vmem [thread:$0]  (!%p902_p4), %s163_s0, 16, %s166_s25, %s154_s22  }
  0x41   : > { %174 = sbr.rel (%p920_p9) target bundleno = 814 (0x32e), region = 28  ;;  %s176_s7 = sand.u32 (!%p920_p9), 1, %s743_s13  }
  0x42   : > { %s454_s20 = sshll.u32 (!%p920_p9), %s176_s7, 2  ;;  %s177_s21 = scalar_lea.sflag (!%p920_p9), [#allocation5], %s176_s7 }
  0x43   : > { %s180_s8 = scalar_lea.vmem (!%p920_p9), [#allocation4], %s454_s20 }
  0x46   : > { %714 = dma.done.wait (%p863_p7), %s177_s21, 64  }
  0x47   : > { %716 = vsyncadd (%p863_p7), %s177_s21, 4294967232  ;;  %s186_s18 = scalar_lea.sflag [#allocation8], %s176_s7  ;;  %s188_s27 = scalar_lea.vmem [#allocation7], %s176_s7 }
  0x48   : > { %718 = dma.done.wait (%p863_p7), %s186_s18, 16  }
  0x49   : > { %720 = vsyncadd (%p863_p7), %s186_s18, 4294967280  ;;  %s210_s0 = sand.u32 1, %s731_s10   ;;  %p455_p4 = scmp.ne.s32.totalorder %s751_s15, 0 }
  0x4a   : > { %s949_s22 = scalar_lea.vmem [#allocation9], %s210_s0 }
  0x4b   : > { %215 = sbr.rel (%p455_p4) target bundleno = 82 (0x52), region = 40 }
  0x50   : > { %vm216_vm0 = vcmask 3072   ;;  %v771_v0 = vmov 0.0  }
  0x51   : > { %217 = vst.msk [vmem:[#allocation2] sm:$0xf] %vm216_vm0, %v771_v0  ;;  %218 = vst.msk [vmem:[#allocation3] sm:$0xf] %vm216_vm0, %v771_v0 }
  0x52 PF: > { %s456_s23 = sshll.u32 %s751_s15, 7  ;;  %v223_v1 = vlaneseq  ;;  %vm237_vm1 = vcmask 1043456   ;;  %v457_v2 = vld [vmem:[%s188_s27] ss:$0 sm:$0xff]  ;;  %v219_v3 = vld [vmem:[%s180_s8] sm:$0xf] }
  0x53   : > { %s222_s28 = ssub.s32 256, %s456_s23  ;;  %v238_v7 = vsel %vm237_vm1, %v219_v3, -inf  ;;  %v772_v11 = vmov 0.0   ;;  %vm263_vm5 = vcmask 3072   ;;  %p458_p7 = scmp.ne.s32.totalorder %s751_s15, 1 }
  0x54   : > { %v224_v4 = vand.u32 127, %v223_v1  ;;  %v225_v5 = vstv %s222_s28  ;;  %v228_v6 = vshrl.u32 %v223_v1, 7  ;;  %v239_v8 = vrot.slane %v238_v7, 4 }
  0x56   : > { %vm226_vm2 = vcmp.lt.s32.totalorder %v224_v4, %v225_v5  ;;  %vm233_vm3 = vcmp.eq.s32.totalorder %v457_v2, %v228_v6  ;;  %v240_v10 = vmax.f32 %v238_v7, %v239_v8 }
  0x57   : > { %vm954_vm4 = vmand %vm233_vm3, %vm226_vm2 }
  0x58   : > { %v258_v12 = vsel %vm954_vm4, 1.0, %v772_v11  ;;  %v241_v14 = vrot.slane %v240_v10, 2  ;;  %v257_v33 = vld [vmem:[#allocation2] sm:$0xf]  ;;  %v265_v36 = vld [vmem:[#allocation3] sm:$0xf] }
  0x59   : > { %v259_v13 = vsel %vm237_vm1, %v258_v12, 0.0 }
  0x5a   : > { %260 = vadd.xlane.f32.xlu0 %v259_v13  ;;  %v242_v15 = vmax.f32 %v240_v10, %v241_v14 }
  0x5c   : > { %v243_v16 = vrot.slane %v242_v15, 1 }
  0x5e   : > { %v244_v17 = vmax.f32 %v242_v15, %v243_v16 }
  0x60   : > { %v245_v18 = vsub.f32 %v219_v3, %v244_v17 }
  0x62   : > { %v246_v19 = vmul.f32 1.442695, %v245_v18 }
  0x64   : > { %579 = vpow2.f32 %v246_v19 }
  0x71   : > { %v580_v20 = vpop.eup %579 }
  0x72   : > { %v248_v21 = vsel %vm237_vm1, %v580_v20, 0.0 }
  0x73   : > { %v249_v22 = vrot.slane %v248_v21, 4 }
  0x75   : > { %v250_v23 = vadd.f32 %v249_v22, %v248_v21 }
  0x77   : > { %v251_v24 = vrot.slane %v250_v23, 2 }
  0x79   : > { %v252_v25 = vadd.f32 %v251_v24, %v250_v23 }
  0x7b   : > { %v253_v26 = vrot.slane %v252_v25, 1 }
  0x7d   : > { %v254_v27 = vadd.f32 %v253_v26, %v252_v25 }
  0x7f   : > { %581 = vlog2.f32 %v254_v27 }
  0x8c   : > { %v582_v28 = vpop.eup %581 }
  0x8d   : > { %v256_v29 = vmul.f32 0.6931472, %v582_v28 }
  0x8f   : > { %v266_v30 = vsub.f32 %v245_v18, %v256_v29 }
  0x91   : > { %v267_v31 = vsel %vm954_vm4, %v266_v30, 0.0 }
  0x92   : > { %v268_v32 = vsel %vm237_vm1, %v267_v31, 0.0 }
  0x93   : > { %269 = vadd.xlane.f32.xlu0 %v268_v32 }
  0xe3   : > { %v261_v34 = vpop.xlane.xlu0 %260 }
  0xe4   : > { %v262_v35 = vadd.f32 %v261_v34, %v257_v33 }
  0xe6   : > { %264 = vst.msk [vmem:[#allocation2] sm:$0xf] %vm263_vm5, %v262_v35 }
 0x11b   : > { %276 = sbr.rel (%p458_p7) target bundleno = 791 (0x317), region = 44 }
 0x11c   : > { %v270_v37 = vpop.xlane.xlu0 %269 }
 0x11d   : > { %v271_v38 = vadd.f32 %v270_v37, %v265_v36 }
 0x11f   : > { %272 = vst.msk [vmem:[#allocation3] sm:$0xf] %vm263_vm5, %v271_v38 }
 0x120   : > { %v277_v39 = vld [vmem:[#allocation2] sm:$0xf] }
 0x121   : > { %v279_v40 = vsel %vm263_vm5, %v277_v39, 0.0 }
 0x122   : > { %280 = vadd.xlane.f32.xlu0 %v279_v40 }
 0x126   : > { %v278_v53 = vld [vmem:[#allocation3] sm:$0xf] }
 0x1ab   : > { %v281_v41 = vpop.xlane.xlu0 %280 }
 0x1ac   : > { %v282_v42 = vrot.slane %v281_v41, 4 }
 0x1ae   : > { %v283_v43 = vadd.f32 %v282_v42, %v281_v41 }
 0x1b0   : > { %v284_v44 = vrot.slane %v283_v43, 2 }
 0x1b2   : > { %v285_v45 = vadd.f32 %v284_v44, %v283_v43 }
 0x1b4   : > { %v286_v46 = vrot.slane %v285_v45, 1 }
 0x1b6   : > { %v287_v47 = vadd.f32 %v286_v46, %v285_v45 }
 0x1b8   : > { %462 = vpush %v287_v47 }
 0x1e9   : > { %s463_s29 = spop %462 }
 0x1ea   : > { %p289_p8 = scmp.gt.f32.partialorder %s463_s29, 0.0 }
 0x1ec   : > { %s1065_s29 = smov (!%p289_p8, %s463_s29), 1.0 }
 0x1ed   : > { %v291_v48 = vstv %s1065_s29 }
 0x1ee   : > { %583 = vrcp.f32 %v291_v48 }
 0x1fb   : > { %v584_v49 = vpop.eup %583 }
 0x1fc   : > { %v293_v50 = vmul.f32 %v584_v49, %v277_v39 }
 0x1fe   : > { %v295_v51 = vsub.f32 1.0, %v293_v50  ;;  %vm294_vm6 = vcmp.gt.f32.partialorder %v293_v50, 0.0 }
 0x200   : > { %v296_v52 = vadd.f32 1.0, %v295_v51 }
 0x202   : > { %v297_v54 = vsel %vm294_vm6, %v296_v52, 1.0 }
 0x203   : > { %v309_v55 = vmul.f32 %v297_v54, %v277_v39  ;;  %v298_v56 = vmul.f32 %v297_v54, %v278_v53 }
 0x205   : > { %v310_v57 = vsel %vm263_vm5, %v309_v55, 0.0  ;;  %v299_v58 = vsel %vm263_vm5, %v298_v56, 0.0 }
 0x206   : > { %311 = vadd.xlane.f32.xlu1 %v310_v57  ;;  %300 = vadd.xlane.f32.xlu0 %v299_v58 }
 0x28f   : > { %v312_v59 = vpop.xlane.xlu1 %311  ;;  %v301_v60 = vpop.xlane.xlu0 %300 }
 0x290   : > { %v313_v61 = vrot.slane %v312_v59, 4  ;;  %v302_v62 = vrot.slane %v301_v60, 4 }
 0x292   : > { %v314_v63 = vadd.f32 %v313_v61, %v312_v59  ;;  %v303_v0 = vadd.f32 %v302_v62, %v301_v60 }
 0x294   : > { %v315_v1 = vrot.slane %v314_v63, 2  ;;  %v304_v2 = vrot.slane %v303_v0, 2 }
 0x296   : > { %v316_v3 = vadd.f32 %v315_v1, %v314_v63  ;;  %v305_v4 = vadd.f32 %v304_v2, %v303_v0 }
 0x298   : > { %v306_v5 = vrot.slane %v305_v4, 1  ;;  %v317_v6 = vrot.slane %v316_v3, 1 }
 0x29a   : > { %v307_v7 = vadd.f32 %v306_v5, %v305_v4  ;;  %v318_v8 = vadd.f32 %v317_v6, %v316_v3 }
 0x29c   : > { %464 = vpush %v307_v7 }
 0x29d   : > { %466 = vpush %v318_v8 }
 0x2cd   : > { %s465_s15 = spop %464 }
 0x2ce   : > { %s467_s25 = spop %466  ;;  %s322_s26 = ssub.f32 0.0, %s465_s15 }
 0x2cf   : > { %p320_p1 = scmp.gt.f32.partialorder %s467_s25, 0.0 }
 0x2d1   : > { %s1067_s25 = smov (!%p320_p1, %s467_s25), 1.0 }
 0x2d2   : > { %v323_v9 = vstv %s1067_s25 }
 0x2d3   : > { %585 = vrcp.f32 %v323_v9 }
 0x2e0   : > { %v586_v10 = vpop.eup %585 }
 0x2e1   : > { %468 = vpush %v586_v10 }
 0x312   : > { %s469_s24 = spop %468 }
 0x313   : > { %s326_s30 = smul.f32 %s469_s24, %s322_s26 }
 0x315   : > { %v327_v11 = vstv %s326_s30 }
 0x316   : > { %329 = vst [vmem:[%s949_s22] sm:$0x1] %v327_v11 }
 0x317 PF: > { %s459_s12 = sshll.u32 %s755_s16, 4  ;;  %s343_s8 = sshll.u32 %s949_s22, 4  ;;  %s344_s8 = int_to_ptr.vmem [resolvable:$true] %s343_s8 }
 0x318   : > { %s341_s21 = scalar_lea.hbm %s1030_s2, %s459_s12  ;;  %s331_s18 = scalar_lea.sflag [#allocation6], %s210_s0 }
 0x319   : > { %s643_s27 = scalar_lea.vmem %s344_s8, 16  ;;  %s773_s23 = smov [#allocation9]  }
 0x31a   : > { %p644_p9 = scmp.ne.s32.totalorder %s344_s8, %s643_s27  ;;  %s647_s28 = sshll.u32 %s773_s23, 4  ;;  %s648_s28 = int_to_ptr.vmem [resolvable:$false] %s647_s28 }
 0x31b   : > { %s649_s29 = scalar_lea.vmem %s648_s28, 32  ;;  %p650_p3 = scmp.lt.s32.totalorder %s344_s8, %s648_s28 }
 0x31c   : > { %p645_p10 = pnand %p644_p9, %p871_p12  ;;  %p651_p5 = scmp.lt.s32.totalorder %s649_s29, %s643_s27 }
 0x31e   : > { %p646_p11 = pneg %p645_p10  ;;  %p652_p6 = por %p651_p5, %p650_p3 }
 0x320   : > { %p653_p13 = pnand %p652_p6, %p646_p11 }
 0x322   : > { %656 = shalt.err (!%p653_p13)
}
 0x323   : > { %s657_s16 = scalar_lea.hbm %s341_s21, 16  ;;  %s661_s15 = scalar_lea.hbm %s1030_s2, 32 }
 0x324   : > { %p658_p0 = scmp.ne.s32.totalorder %s341_s21, %s657_s16  ;;  %p662_p8 = scmp.lt.s32.totalorder %s341_s21, %s1030_s2 }
 0x325   : > { %p663_p1 = scmp.lt.s32.totalorder %s661_s15, %s657_s16 }
 0x326   : > { %p659_p4 = pnand %p658_p0, %p871_p12 }
 0x327   : > { %p664_p9 = por %p663_p1, %p662_p8 }
 0x328   : > { %p660_p7 = pneg %p659_p4 }
 0x32a   : > { %p665_p10 = pnand %p664_p9, %p660_p7 }
 0x32c   : > { %668 = shalt.err (!%p665_p10)
}
 0x32d   : > { %474 = dma.vmem_to_hbm [thread:$0]  (%p871_p12), %s344_s8, 16, %s341_s21, %s331_s18  }
 0x32e PF: > { %p488_p11 = scmp.ge.s32.totalorder %s767_s19, 2  ;;  %s355_s24 = sand.u32 1, %s727_s9  }
 0x32f   : > { %s356_s30 = scalar_lea.sflag [#allocation6], %s355_s24 }
 0x330   : > { %p484_p3 = pnand %p488_p11, %p884_p2 }
 0x332   : > { %p485_p5 = pneg %p484_p3 }
 0x334   : > { %722 = dma.done.wait (%p485_p5), %s356_s30, 16  }
 0x335   : > { %724 = vsyncadd (%p485_p5), %s356_s30, 4294967280  ;;  %s21_s19 = sadd.s32 1, %s767_s19   ;;  %s1047_s16 = sld [smem:[#allocation13_spill]] }
 0x336   : > { %p18_p6 = scmp.ge.s32.totalorder %s21_s19, 6   ;;  %s1048_s3 = sld [smem:[#allocation14_spill]] }
 0x337   : > { %s1049_s18 = sld [smem:[#allocation15_spill]]  ;;  %s1050_s9 = smov %s731_s10 }
 0x338   : > { %s1051_s10 = smov %s735_s11  ;;  %s1052_s11 = smov %s876_s4 }
 0x339   : > { %s1053_s12 = smov %s743_s13  ;;  %s1054_s13 = smov %s747_s14 }
 0x33a   : > { %s1055_s14 = smov %s879_s5  ;;  %s1056_s15 = smov %s759_s17 }
 0x33b   :  { %20 = sbr.rel (!%p18_p6) target bundleno = 13 (0xd), region = 94 }
 0x33c   : > { %s1057_s17 = smov %s1048_s3 }
 0x340   :  { %360 = vsyncpa [#allocation5], 1 }
 0x341   :  { %362 = vsyncpa [#allocation5 + $0x1], 1 }
 0x342   :  { %363 = vsyncpa [#allocation8], 1 }
 0x343   :  { %365 = vsyncpa [#allocation8 + $0x1], 1 }
 0x344   :  { %366 = vsyncpa [#allocation6], 1 }
 0x345   :  { %368 = vsyncpa [#allocation6 + $0x1], 1 }

</bundles_post_ra>
